<compile_context>
chip_gen: v7x
topology: tpu7x:2x2x1
jax: 0.10.0
libtpu: 0.0.40
codegen_flags: <defaults>
</compile_context>

<pallas_src>
import jax
import jax.numpy as jnp
from jax.experimental import pallas as pl
from jax.experimental.pallas import tpu as pltpu


def _temporal_pool_kernel(x_ref, o_ref):
    # x_ref: (B_TILE, S, TD)  -- S frames of B_TILE clips, one lane-tile of c*h*w
    # o_ref: (B_TILE, T, TD)  -- T = S // 2 pooled frames
    T = o_ref.shape[1]
    prev = None  # frame 2t-1: reused from the previous window's 2(t-1)+1 tap
    for t in range(T):  # S = n_segment is small -> fully unrolled, static indices
        c0 = x_ref[:, 2 * t, :]
        c1 = x_ref[:, 2 * t + 1, :]
        m = jnp.maximum(c0, c1)
        if prev is not None:
            # t == 0 window is [-inf, x0, x1]; dropping the -inf tap is exact.
            m = jnp.maximum(m, prev)
        o_ref[:, t, :] = m
        prev = c1


def _choose_tiles(n_batch, S, D, itemsize, target_bytes):
    """Pick (B_TILE, TD): lane-dense blocks of roughly `target_bytes` input."""
    clip_bytes = S * D * itemsize  # one clip's full-D input block
    if clip_bytes >= target_bytes:
        # Large D: one clip per step, tile the lane axis (multiple of 128;
        # cdiv grid + edge masking, so TD need not divide D).
        td_cap = max(1, target_bytes // (S * itemsize))
        if D <= td_cap:
            td = D
        else:
            td = max(128, (td_cap // 128) * 128)
        return 1, td
    # Small D: batch several clips per grid step to reach the byte target.
    b_tile = max(1, min(n_batch, target_bytes // clip_bytes))
    return b_tile, D


def temporal_pool(x, n_segment, *, target_block_bytes=2 * 1024 * 1024):
    """Pallas equivalent of TemporalPool.temporal_pool (NCHW frames in/out)."""
    nt, c, h, w = x.shape
    if nt % n_segment != 0:
        raise ValueError("nt must be divisible by n_segment")
    if n_segment % 2 != 0:
        raise ValueError("n_segment must be even (output is viewed as nt // 2 frames)")
    n_batch = nt // n_segment
    S = n_segment
    T = S // 2
    D = c * h * w
    itemsize = jnp.dtype(x.dtype).itemsize

    # Contiguous reshape only (no transpose, no pad): (nt,c,h,w) -> (n_batch,S,D).
    xf = x.reshape(n_batch, S, D)

    B_TILE, TD = _choose_tiles(n_batch, S, D, itemsize, target_block_bytes)
    grid_b = pl.cdiv(n_batch, B_TILE)
    grid_d = pl.cdiv(D, TD)

    # Ensure >= 2 grid steps so both v7x TensorCores get work (HBM-bound op).
    if grid_b * grid_d < 2 and D >= 256:
        TD = ((pl.cdiv(D, 2) + 127) // 128) * 128
        grid_d = pl.cdiv(D, TD)

    cost = pl.CostEstimate(
        flops=2 * n_batch * T * D,          # (2T-1) maxes per lane per clip
        transcendentals=0,
        bytes_accessed=int(1.5 * n_batch * S * D * itemsize),  # read + half-size write
    )

    out = pl.pallas_call(
        _temporal_pool_kernel,
        out_shape=jax.ShapeDtypeStruct((n_batch, T, D), x.dtype),
        grid_spec=pltpu.PrefetchScalarGridSpec(
            num_scalar_prefetch=0,
            grid=(grid_b, grid_d),
            in_specs=[pl.BlockSpec((B_TILE, S, TD), lambda b, d: (b, 0, d))],
            out_specs=pl.BlockSpec((B_TILE, T, TD), lambda b, d: (b, 0, d)),
        ),
        compiler_params=pltpu.CompilerParams(
            dimension_semantics=("parallel", "parallel")),
        cost_estimate=cost,
    )(xf)

    # Output ordering matches torch: (n_batch, T, c, h, w).view(nt//2, c, h, w).
    return out.reshape(n_batch * T, c, h, w)


class TemporalPool:
    """Mirror of x_temporal/core/CMR.py::TemporalPool."""

    def __init__(self, net=None, n_segment=8):
        # TODO(synk): `net` is an arbitrary wrapped sub-network in the original
        # module and has no single Pallas equivalent; identity is used here.
        self.net = net if net is not None else (lambda y: y)
        self.n_segment = n_segment

    def __call__(self, x):
        return self.net(temporal_pool(x, self.n_segment))


if __name__ == "__main__":
    n_batch, n_segment = 2, 8
    c, h, w = 4, 16, 16
    nt = n_batch * n_segment

    key = jax.random.PRNGKey(0)
    x = jax.random.normal(key, (nt, c, h, w), dtype=jnp.float32)

    module = TemporalPool(net=None, n_segment=n_segment)
    out = module(x)
    out = jax.block_until_ready(out)

    # Pure-JAX reference with identical semantics to
    # F.max_pool3d(kernel=(3,1,1), stride=(2,1,1), padding=(1,0,0)).
    T = n_segment // 2
    xr = x.reshape(n_batch, n_segment, c, h, w)
    xp = jnp.pad(xr, ((0, 0), (1, 1), (0, 0), (0, 0), (0, 0)),
                 constant_values=-jnp.inf)
    ref = jnp.stack(
        [jnp.max(xp[:, 2 * t:2 * t + 3], axis=1) for t in range(T)], axis=1)
    ref = ref.reshape(n_batch * T, c, h, w)

    assert out.shape == ref.shape == (nt // 2, c, h, w)
    assert jnp.allclose(out, ref, atol=0.0, rtol=0.0)

    print("KERNEL_OK")
</pallas_src>

<mosaic_0001>
module attributes {stable_mosaic.version = 11 : i64} {
  func.func @_temporal_pool_kernel(%arg0: i32, %arg1: i32, %arg2: memref<2x8x512xf32, #tpu.memory_space<vmem>>, %arg3: memref<2x4x512xf32, #tpu.memory_space<vmem>>) attributes {dimension_semantics = [#tpu.dimension_semantics<parallel>, #tpu.dimension_semantics<parallel>], iteration_bounds = array<i64: 1, 2>, scalar_prefetch = 0 : i64, scratch_operands = 0 : i64, tpu.core_type = #tpu.core_type<tc>, window_params = [{transform_indices = @transform_0, window_bounds = array<i64: 2, 8, 512>}, {transform_indices = @transform_1, window_bounds = array<i64: 2, 4, 512>}]} {
    %c0 = arith.constant 0 : index
    %c0_0 = arith.constant 0 : index
    %c0_1 = arith.constant 0 : index
    %0 = vector.load %arg2[%c0, %c0_0, %c0_1] : memref<2x8x512xf32, #tpu.memory_space<vmem>>, vector<2x1x512xf32>
    %1 = vector.shape_cast %0 : vector<2x1x512xf32> to vector<2x512xf32>
    %c0_2 = arith.constant 0 : index
    %c1 = arith.constant 1 : index
    %c0_3 = arith.constant 0 : index
    %2 = vector.load %arg2[%c0_2, %c1, %c0_3] : memref<2x8x512xf32, #tpu.memory_space<vmem>>, vector<2x1x512xf32>
    %3 = vector.shape_cast %2 : vector<2x1x512xf32> to vector<2x512xf32>
    %4 = arith.maximumf %1, %3 : vector<2x512xf32>
    %c0_4 = arith.constant 0 : index
    %c0_5 = arith.constant 0 : index
    %c0_6 = arith.constant 0 : index
    %5 = vector.load %arg3[%c0_4, %c0_5, %c0_6] : memref<2x4x512xf32, #tpu.memory_space<vmem>>, vector<2x1x512xf32>
    %6 = vector.shape_cast %5 : vector<2x1x512xf32> to vector<2x512xf32>
    %7 = vector.shape_cast %4 : vector<2x512xf32> to vector<2x1x512xf32>
    tpu.vector_store %arg3[%c0_4, %c0_5, %c0_6], %7 {strides = array<i32>} : memref<2x4x512xf32, #tpu.memory_space<vmem>>, vector<2x1x512xf32>,
    %c0_7 = arith.constant 0 : index
    %c2 = arith.constant 2 : index
    %c0_8 = arith.constant 0 : index
    %8 = vector.load %arg2[%c0_7, %c2, %c0_8] : memref<2x8x512xf32, #tpu.memory_space<vmem>>, vector<2x1x512xf32>
    %9 = vector.shape_cast %8 : vector<2x1x512xf32> to vector<2x512xf32>
    %c0_9 = arith.constant 0 : index
    %c3 = arith.constant 3 : index
    %c0_10 = arith.constant 0 : index
    %10 = vector.load %arg2[%c0_9, %c3, %c0_10] : memref<2x8x512xf32, #tpu.memory_space<vmem>>, vector<2x1x512xf32>
    %11 = vector.shape_cast %10 : vector<2x1x512xf32> to vector<2x512xf32>
    %12 = arith.maximumf %9, %11 : vector<2x512xf32>
    %13 = arith.maximumf %12, %3 : vector<2x512xf32>
    %c0_11 = arith.constant 0 : index
    %c1_12 = arith.constant 1 : index
    %c0_13 = arith.constant 0 : index
    %14 = vector.load %arg3[%c0_11, %c1_12, %c0_13] : memref<2x4x512xf32, #tpu.memory_space<vmem>>, vector<2x1x512xf32>
    %15 = vector.shape_cast %14 : vector<2x1x512xf32> to vector<2x512xf32>
    %16 = vector.shape_cast %13 : vector<2x512xf32> to vector<2x1x512xf32>
    tpu.vector_store %arg3[%c0_11, %c1_12, %c0_13], %16 {strides = array<i32>} : memref<2x4x512xf32, #tpu.memory_space<vmem>>, vector<2x1x512xf32>,
    %c0_14 = arith.constant 0 : index
    %c4 = arith.constant 4 : index
    %c0_15 = arith.constant 0 : index
    %17 = vector.load %arg2[%c0_14, %c4, %c0_15] : memref<2x8x512xf32, #tpu.memory_space<vmem>>, vector<2x1x512xf32>
    %18 = vector.shape_cast %17 : vector<2x1x512xf32> to vector<2x512xf32>
    %c0_16 = arith.constant 0 : index
    %c5 = arith.constant 5 : index
    %c0_17 = arith.constant 0 : index
    %19 = vector.load %arg2[%c0_16, %c5, %c0_17] : memref<2x8x512xf32, #tpu.memory_space<vmem>>, vector<2x1x512xf32>
    %20 = vector.shape_cast %19 : vector<2x1x512xf32> to vector<2x512xf32>
    %21 = arith.maximumf %18, %20 : vector<2x512xf32>
    %22 = arith.maximumf %21, %11 : vector<2x512xf32>
    %c0_18 = arith.constant 0 : index
    %c2_19 = arith.constant 2 : index
    %c0_20 = arith.constant 0 : index
    %23 = vector.load %arg3[%c0_18, %c2_19, %c0_20] : memref<2x4x512xf32, #tpu.memory_space<vmem>>, vector<2x1x512xf32>
    %24 = vector.shape_cast %23 : vector<2x1x512xf32> to vector<2x512xf32>
    %25 = vector.shape_cast %22 : vector<2x512xf32> to vector<2x1x512xf32>
    tpu.vector_store %arg3[%c0_18, %c2_19, %c0_20], %25 {strides = array<i32>} : memref<2x4x512xf32, #tpu.memory_space<vmem>>, vector<2x1x512xf32>,
    %c0_21 = arith.constant 0 : index
    %c6 = arith.constant 6 : index
    %c0_22 = arith.constant 0 : index
    %26 = vector.load %arg2[%c0_21, %c6, %c0_22] : memref<2x8x512xf32, #tpu.memory_space<vmem>>, vector<2x1x512xf32>
    %27 = vector.shape_cast %26 : vector<2x1x512xf32> to vector<2x512xf32>
    %c0_23 = arith.constant 0 : index
    %c7 = arith.constant 7 : index
    %c0_24 = arith.constant 0 : index
    %28 = vector.load %arg2[%c0_23, %c7, %c0_24] : memref<2x8x512xf32, #tpu.memory_space<vmem>>, vector<2x1x512xf32>
    %29 = vector.shape_cast %28 : vector<2x1x512xf32> to vector<2x512xf32>
    %30 = arith.maximumf %27, %29 : vector<2x512xf32>
    %31 = arith.maximumf %30, %20 : vector<2x512xf32>
    %c0_25 = arith.constant 0 : index
    %c3_26 = arith.constant 3 : index
    %c0_27 = arith.constant 0 : index
    %32 = vector.load %arg3[%c0_25, %c3_26, %c0_27] : memref<2x4x512xf32, #tpu.memory_space<vmem>>, vector<2x1x512xf32>
    %33 = vector.shape_cast %32 : vector<2x1x512xf32> to vector<2x512xf32>
    %34 = vector.shape_cast %31 : vector<2x512xf32> to vector<2x1x512xf32>
    tpu.vector_store %arg3[%c0_25, %c3_26, %c0_27], %34 {strides = array<i32>} : memref<2x4x512xf32, #tpu.memory_space<vmem>>, vector<2x1x512xf32>,
    return
  }
  func.func @transform_0(%arg0: i32, %arg1: i32) -> (i32, i32, i32) {
    %c0_i32 = arith.constant 0 : i32
    %c0_i32_0 = arith.constant 0 : i32
    return %arg0, %c0_i32, %arg1 : i32, i32, i32
  }
  func.func @transform_1(%arg0: i32, %arg1: i32) -> (i32, i32, i32) {
    %c0_i32 = arith.constant 0 : i32
    %c0_i32_0 = arith.constant 0 : i32
    return %arg0, %c0_i32, %arg1 : i32, i32, i32
  }
}

</mosaic_0001>

<bundles_post_ra>
// kernel: tpu_custom_call.1
= control target key start
LH: loop header
LB: loop body
LE: loop exit
PB: predicated region body
PF: predicated region fallthrough
CT: control target
= control target key end

     0   :  { %6 = vsyncpa [#allocation3], 0  ;;  %s792_s0 = inlined_call_operand.hbm [shape: f32[2,8,1024], index: 0, kind: input, shape index: {}]   ;;  %s793_s1 = inlined_call_operand.hbm [shape: f32[2,4,1024], index: 1, kind: output, shape index: {}]  }
   0x1   :  { %8 = vsyncpa [#allocation3 + $0x1], 0 }
   0x2   :  { %9 = vsyncpa [#allocation4], 0 }
   0x3   :  { %11 = vsyncpa [#allocation4 + $0x1], 0  ;;  %s565_s6 = smov 0   ;;  %s567_s7 = smov 0  }
   0x4   :  { %s569_s8 = smov 0   ;;  %s571_s9 = smov 0  }
   0x5   :  { %s573_s10 = smov 0   ;;  %s575_s11 = smov 0  }
   0x6 LB: > { %s326_s12 = sadd.s32 4294967295, %s545_s11   ;;  %s327_s13 = sadd.s32 4294967294, %s545_s11   ;;  %s545_s11 = sphi %s575_s11, %s17_s11   ;;  %s541_s10 = sphi %s573_s10, %s809_s10   ;;  %s537_s9 = sphi %s571_s9, %s808_s9   ;;  %s533_s8 = sphi %s569_s8, %s807_s8   ;;  %s529_s7 = sphi %s567_s7, %s806_s7   ;;  %s525_s6 = sphi %s565_s6, %s805_s6  }
   0x7   : > { %s26_s14 = sadd.s32 1, %s541_s10  ;;  %s38_s15 = sadd.s32 1, %s533_s8 }
   0x8   : > { %p27_p0 = scmp.ge.s32.totalorder %s26_s14, 2  ;;  %p45_p1 = scmp.ne.s32.totalorder %s533_s8, %s529_s7 }
   0x9   : > { %p46_p2 = scmp.eq.s32.totalorder %s545_s11, 0  ;;  %p51_p3 = scmp.ne.s32.totalorder %s529_s7, %s525_s6 }
   0xa   : > { %s811_s14 = smov (%p27_p0, %s26_s14), 0  ;;  %p52_p5 = scmp.eq.s32.totalorder %s326_s12, 0 }
   0xb   : > { %p606_p4 = por %p46_p2, %p45_p1  ;;  %s34_s17 = ssub.s32 %s541_s10, %s811_s14 }
   0xc   : > { %p77_p6 = scmp.eq.s32.totalorder %s326_s12, 1  ;;  %p36_p7 = scmp.eq.s32.totalorder %s34_s17, 0 }
   0xd   : > { %p612_p8 = por %p52_p5, %p51_p3  ;;  %p83_p10 = scmp.eq.s32.totalorder %s327_s13, 1 }
   0xe   : > { %p616_p9 = por %p77_p6, %p45_p1  ;;  %p377_p13 = scmp.lt.s32.totalorder %s545_s11, 2 }
   0xf   : > { %s621_s20 = scalar_select %p36_p7, %s533_s8, %s38_s15  }
  0x10   : > { %s797_s19 = scalar_select %p616_p9, 1, 0 }
  0x11   : > { %p623_p11 = por %p83_p10, %p51_p3  ;;  %s103_s22 = sand.u32 1, %s533_s8  }
  0x12   : > { %s330_s23 = sshll.u32 %s103_s22, 6  ;;  %s363_s24 = sshll.u32 %s541_s10, 9 }
  0x13   : > { %s798_s21 = scalar_select %p623_p11, 1, 0 }
  0x14   : > { %s634_s27 = scalar_lea.hbm %s792_s0, %s363_s24  ;;  %s107_s28 = scalar_lea.vmem [#allocation2], %s330_s23 }
  0x15   : > { %s117_s29 = sshll.u32 %s107_s28, 4  ;;  %p640_p0 = pnand %p377_p13, %p606_p4  ;;  %s636_s29 = int_to_ptr.vmem [resolvable:$true] %s117_s29 }
  0x16   : > { %s644_s2 = scalar_lea.sflag [#allocation3], %s103_s22  ;;  %s433_s3 = scalar_lea.hbm %s634_s27, 1024 }
  0x17   : > { %p434_p1 = scmp.ne.s32.totalorder %s634_s27, %s433_s3  ;;  %p435_p2 = pneg %p640_p0 }
  0x18   : > { %s438_s12 = scalar_lea.hbm %s792_s0, 2048  ;;  %p439_p4 = scmp.lt.u32.totalorder %s634_s27, %s792_s0 }
  0x19   : > { %p436_p3 = pnand %p435_p2, %p434_p1  ;;  %p440_p6 = scmp.lt.u32.totalorder %s438_s12, %s433_s3 }
  0x1a   : > { %p442_p10 = scmp.lt.u32.totalorder %s433_s3, %s634_s27 }
  0x1b   : > { %p437_p5 = pneg %p436_p3  ;;  %p441_p7 = por %p440_p6, %p439_p4 }
  0x1d   : > { %p443_p13 = por %p442_p10, %p441_p7 }
  0x1f   : > { %p444_p12 = pnand %p443_p13, %p437_p5 }
  0x21   : > { %447 = shalt.err (!%p444_p12)
}
  0x22   : > { %s448_s16 = scalar_lea.vmem %s636_s29, 1024  ;;  %s547_s17 = smov [#allocation2]  }
  0x23   : > { %p449_p1 = scmp.ne.s32.totalorder %s636_s29, %s448_s16  ;;  %s453_s22 = sshll.u32 %s547_s17, 4  ;;  %s454_s22 = int_to_ptr.vmem [resolvable:$false] %s453_s22 }
  0x24   : > { %s455_s23 = scalar_lea.vmem %s454_s22, 2048  ;;  %p456_p9 = scmp.lt.s32.totalorder %s636_s29, %s454_s22 }
  0x25   : > { %p451_p3 = pnand %p449_p1, %p435_p2  ;;  %p457_p4 = scmp.lt.s32.totalorder %s455_s23, %s448_s16 }
  0x27   : > { %p452_p11 = pneg %p451_p3  ;;  %p458_p6 = por %p457_p4, %p456_p9 }
  0x29   : > { %p459_p7 = pnand %p458_p6, %p452_p11 }
  0x2b   : > { %462 = shalt.err (!%p459_p7)
}
  0x2c   : > { %s548_s24 = smov 1024   ;;  %s549_s25 = smov 512  }
  0x2d   : > { %s550_s26 = smov 32   ;;  %p333_p12 = scmp.ge.s32.totalorder %s545_s11, 1 }
  0x2e   : > { %372 = dma.hbm_to_vmem [thread:$0]  (!%p640_p0), %s634_s27, 1024, %s636_s29, %s644_s2, %s548_s24, %s549_s25, %s550_s26  }
  0x2f   : > { %p125_p2 = scmp.lt.s32.totalorder %s545_s11, 3 }
  0x31   : > { %p126_p5 = pnand %p333_p12, %p125_p2 }
  0x32   : > { %s675_s28 = sand.u32 (!%p126_p5), 1, %s529_s7  }
  0x33   : > { %129 = sbr.rel (%p126_p5) target bundleno = 95 (0x5f), region = 24  ;;  %s334_s3 = sshll.u32 (!%p126_p5), %s675_s28, 6 }
  0x34   : > { %s132_s4 = scalar_lea.sflag (!%p126_p5), [#allocation3], %s675_s28  ;;  %s679_s5 = scalar_lea.vmem (!%p126_p5), [#allocation2], %s334_s3 }
  0x3a   : > { %516 = dma.done.wait (%p612_p8), %s132_s4, 1024  }
  0x3b   : > { %518 = vsyncadd (%p612_p8), %s132_s4, 4294966272  ;;  %s335_s27 = sshll.u32 %s675_s28, 5  ;;  %v167_v0 = vlaneseq  ;;  %s364_s30 = sshll.u32 %s537_s9, 8  ;;  %v158_v2 = vld [vmem:[%s679_s5] ss:$8 sm:$0xf] }
  0x3c   : > { %s690_s29 = scalar_lea.vmem [#allocation5], %s335_s27  ;;  %v337_v3 = vld [vmem:[%s679_s5 + $0x1] ss:$8 sm:$0xf]  ;;  %s727_s13 = scalar_lea.hbm %s793_s1, %s364_s30 }
  0x3d   : > { %vm686_vm0 = vcmp.lt.s32.totalorder %v167_v0, 512  ;;  %s239_s18 = sshll.u32 %s690_s29, 4  ;;  %v165_v4 = vmax.f32 %v158_v2, %v337_v3  ;;  %v336_v5 = vld [vmem:[%s679_s5 + $0x20] ss:$8 sm:$0xf]  ;;  %s223_s9 = scalar_lea.sflag [#allocation4], %s675_s28  ;;  %s731_s18 = int_to_ptr.vmem [resolvable:$true] %s239_s18 }
  0x3e   : > { %v338_v6 = vld [vmem:[%s679_s5 + $0x21] ss:$8 sm:$0xf]  ;;  %v340_v8 = vld [vmem:[%s679_s5 + $0x2] ss:$8 sm:$0xf] }
  0x3f   : > { %v166_v7 = vmax.f32 %v336_v5, %v338_v6  ;;  %v342_v9 = vld [vmem:[%s679_s5 + $0x3] ss:$8 sm:$0xf]  ;;  %171 = vst.msk [vmem:[%s690_s29] ss:$4 sm:$0xf] %vm686_vm0, %v165_v4 }
  0x40   : > { %v182_v10 = vmax.f32 %v340_v8, %v342_v9  ;;  %v341_v11 = vld [vmem:[%s679_s5 + $0x22] ss:$8 sm:$0xf]  ;;  %v343_v12 = vld [vmem:[%s679_s5 + $0x23] ss:$8 sm:$0xf] }
  0x41   : > { %339 = vst.msk [vmem:[%s690_s29 + $0x10] ss:$4 sm:$0xf] %vm686_vm0, %v166_v7  ;;  %v183_v13 = vmax.f32 %v341_v11, %v343_v12  ;;  %v346_v14 = vld [vmem:[%s679_s5 + $0x4] ss:$8 sm:$0xf] }
  0x42   : > { %v348_v15 = vld [vmem:[%s679_s5 + $0x5] ss:$8 sm:$0xf]  ;;  %v184_v16 = vmax.f32 %v182_v10, %v337_v3  ;;  %v347_v18 = vld [vmem:[%s679_s5 + $0x24] ss:$8 sm:$0xf] }
  0x43   : > { %v198_v17 = vmax.f32 %v346_v14, %v348_v15  ;;  %v349_v19 = vld [vmem:[%s679_s5 + $0x25] ss:$8 sm:$0xf]  ;;  %v185_v20 = vmax.f32 %v183_v13, %v338_v6  ;;  %v352_v22 = vld [vmem:[%s679_s5 + $0x6] ss:$8 sm:$0xf] }
  0x44   : > { %v199_v21 = vmax.f32 %v347_v18, %v349_v19  ;;  %v354_v23 = vld [vmem:[%s679_s5 + $0x7] ss:$8 sm:$0xf]  ;;  %344 = vst.msk [vmem:[%s690_s29 + $0x1] ss:$4 sm:$0xf] %vm686_vm0, %v184_v16 }
  0x45   : > { %v200_v24 = vmax.f32 %v198_v17, %v342_v9  ;;  %v214_v25 = vmax.f32 %v352_v22, %v354_v23  ;;  %v353_v26 = vld [vmem:[%s679_s5 + $0x26] ss:$8 sm:$0xf]  ;;  %v355_v27 = vld [vmem:[%s679_s5 + $0x27] ss:$8 sm:$0xf] }
  0x46   : > { %345 = vst.msk [vmem:[%s690_s29 + $0x11] ss:$4 sm:$0xf] %vm686_vm0, %v185_v20  ;;  %v201_v28 = vmax.f32 %v199_v21, %v343_v12  ;;  %v215_v29 = vmax.f32 %v353_v26, %v355_v27  ;;  %s463_s15 = scalar_lea.vmem %s731_s18, 512  ;;  %p802_p9 = scmp.ne.s32.totalorder %s797_s19, 0 }
  0x47   : > { %350 = vst.msk [vmem:[%s690_s29 + $0x2] ss:$4 sm:$0xf] %vm686_vm0, %v200_v24  ;;  %v216_v30 = vmax.f32 %v214_v25, %v348_v15  ;;  %p464_p8 = scmp.ne.s32.totalorder %s731_s18, %s463_s15  ;;  %s551_s16 = smov [#allocation5]  }
  0x48   : > { %351 = vst.msk [vmem:[%s690_s29 + $0x12] ss:$4 sm:$0xf] %vm686_vm0, %v201_v28  ;;  %v217_v31 = vmax.f32 %v215_v29, %v349_v19  ;;  %s467_s17 = sshll.u32 %s551_s16, 4  ;;  %s468_s17 = int_to_ptr.vmem [resolvable:$false] %s467_s17 }
  0x49   : > { %356 = vst.msk [vmem:[%s690_s29 + $0x3] ss:$4 sm:$0xf] %vm686_vm0, %v216_v30  ;;  %p465_p11 = pnand %p464_p8, %p802_p9  ;;  %s469_s22 = scalar_lea.vmem %s468_s17, 1024 }
  0x4a   : > { %357 = vst.msk [vmem:[%s690_s29 + $0x13] ss:$4 sm:$0xf] %vm686_vm0, %v217_v31  ;;  %p470_p10 = scmp.lt.s32.totalorder %s731_s18, %s468_s17  ;;  %p471_p13 = scmp.lt.s32.totalorder %s469_s22, %s463_s15 }
  0x4b   : > { %p466_p0 = pneg %p465_p11 }
  0x4c   : > { %p472_p1 = por %p471_p13, %p470_p10 }
  0x4e   : > { %p473_p3 = pnand %p472_p1, %p466_p0 }
  0x50   : > { %476 = shalt.err (!%p473_p3)
}
  0x51   : > { %s477_s23 = scalar_lea.hbm %s727_s13, 512  ;;  %s481_s26 = scalar_lea.hbm %s793_s1, 1024 }
  0x52   : > { %p478_p4 = scmp.ne.s32.totalorder %s727_s13, %s477_s23  ;;  %p482_p12 = scmp.lt.u32.totalorder %s727_s13, %s793_s1 }
  0x53   : > { %p483_p2 = scmp.lt.u32.totalorder %s481_s26, %s477_s23  ;;  %p485_p8 = scmp.lt.u32.totalorder %s477_s23, %s727_s13 }
  0x54   : > { %p479_p6 = pnand %p478_p4, %p802_p9 }
  0x55   : > { %p484_p5 = por %p483_p2, %p482_p12 }
  0x56   : > { %p480_p7 = pneg %p479_p6 }
  0x57   : > { %p486_p11 = por %p485_p8, %p484_p5 }
  0x59   : > { %p487_p0 = pnand %p486_p11, %p480_p7 }
  0x5b   : > { %490 = shalt.err (!%p487_p0)
}
  0x5c   : > { %s552_s5 = smov 256   ;;  %s553_s27 = smov 512  }
  0x5d   : > { %s554_s29 = smov 16  }
  0x5e   : > { %367 = dma.vmem_to_hbm [thread:$0]  (%p802_p9), %s731_s18, 512, %s727_s13, %s223_s9, %s552_s5, %s553_s27, %s554_s29  }
  0x5f PF: > { %s254_s30 = sand.u32 1, %s525_s6   ;;  %p803_p10 = scmp.ne.s32.totalorder %s798_s21, 0 }
  0x60   : > { %p804_p13 = scmp.ge.s32.totalorder %s545_s11, 2  ;;  %s255_s2 = scalar_lea.sflag [#allocation4], %s254_s30 }
  0x62   : > { %p374_p1 = pnand %p804_p13, %p803_p10 }
  0x64   : > { %520 = dma.done.wait (!%p374_p1), %s255_s2, 512  }
  0x65   : > { %522 = vsyncadd (!%p374_p1), %s255_s2, 4294966784  ;;  %s17_s11 = sadd.s32 1, %s545_s11   ;;  %s805_s6 = smov %s529_s7 }
  0x66   : > { %p14_p3 = scmp.ge.s32.totalorder %s17_s11, 4   ;;  %s806_s7 = smov %s533_s8 }
  0x67   : > { %s807_s8 = smov %s621_s20  ;;  %s808_s9 = smov %s541_s10 }
  0x68   : > { %s809_s10 = smov %s811_s14  ;;  %16 = sbr.rel (!%p14_p3) target bundleno = 6 (0x6), region = 91 }
  0x6f   :  { %260 = vsyncpa [#allocation3], 1 }
  0x70   :  { %262 = vsyncpa [#allocation3 + $0x1], 1 }
  0x71   :  { %263 = vsyncpa [#allocation4], 1 }
  0x72   :  { %265 = vsyncpa [#allocation4 + $0x1], 1 }

</bundles_post_ra>
